<compile_context>
chip_gen: v6e
topology: v6e:2x2x1
jax: 0.10.0
libtpu: 0.0.40
codegen_flags: <defaults>
</compile_context>

<pallas_src>
import jax
import jax.numpy as jnp
from jax.experimental import pallas as pl
from jax.experimental.pallas import tpu as pltpu

_LN_EPS = 1e-5  # nn.LayerNorm default


def _layer_norm(x, gamma, beta, eps=_LN_EPS):
    mean = jnp.mean(x, axis=-1, keepdims=True)
    var = jnp.mean(jnp.square(x - mean), axis=-1, keepdims=True)
    return (x - mean) * jax.lax.rsqrt(var + eps) * gamma + beta


def _ego_critic_kernel(
    ego_ref,                                  # (B, Din)  f32   (shared across critics)
    w0_ref, b0_ref, g0_ref, be0_ref,          # (Din,H) bf16, (1,H) f32 x3
    w1_ref, b1_ref, g1_ref, be1_ref,          # (H,H)  bf16, (1,H) f32 x3
    w2_ref, b2_ref,                           # (1,H) f32, (1,1) f32
    m1_ref, m2_ref,                           # (B,H) f32 pre-scaled keep masks
    q_ref,                                    # (B,1) f32
):
    ego = ego_ref[...]

    # ego_fc0 + layer_norm_ego_1 + ReLU + dropout1
    h = jnp.dot(ego.astype(jnp.bfloat16), w0_ref[...],
                preferred_element_type=jnp.float32) + b0_ref[...]
    h = _layer_norm(h, g0_ref[...], be0_ref[...])
    h = jnp.maximum(h, 0.0)
    h = h * m1_ref[...]

    # ego_fc1 + layer_norm_ego_2 + ReLU + dropout2
    h = jnp.dot(h.astype(jnp.bfloat16), w1_ref[...],
                preferred_element_type=jnp.float32) + b1_ref[...]
    h = _layer_norm(h, g1_ref[...], be1_ref[...])
    h = jnp.maximum(h, 0.0)
    h = h * m2_ref[...]

    # ego_fc2 (H -> 1): lane reduction instead of an N=1 MXU matmul.
    q = jnp.sum(h * w2_ref[...], axis=-1, keepdims=True) + b2_ref[...]
    q_ref[...] = q.astype(q_ref.dtype)


def make_dropout_masks(key, n_critics, batch, hidden, p):
    """Independent pre-scaled keep masks per critic per dropout layer: (2, n, B, H)."""
    if p <= 0.0:
        return jnp.ones((2, n_critics, batch, hidden), jnp.float32)
    keep = jax.random.bernoulli(key, 1.0 - p, (2, n_critics, batch, hidden))
    return keep.astype(jnp.float32) * (1.0 / (1.0 - p))


def crossq_vector_critic_forward(s, a, params, dropout_masks):
    """Returns Q_mean = mean over critics of the ego-critic Q, shape (B, 1)."""
    ego = jnp.concatenate([s, a], axis=1).astype(jnp.float32)
    B, Din = ego.shape
    n, _, H = params["w0"].shape
    m1, m2 = dropout_masks[0], dropout_masks[1]

    per_critic = lambda i: (i, 0, 0)   # leading (squeezed) ensemble axis indexed by grid
    shared = lambda i: (0, 0)

    in_specs = [
        pl.BlockSpec((B, Din), shared),               # ego (resident, same every step)
        pl.BlockSpec((None, Din, H), per_critic),     # w0  (bf16)
        pl.BlockSpec((None, 1, H), per_critic),       # b0
        pl.BlockSpec((None, 1, H), per_critic),       # g0
        pl.BlockSpec((None, 1, H), per_critic),       # be0
        pl.BlockSpec((None, H, H), per_critic),       # w1  (bf16)
        pl.BlockSpec((None, 1, H), per_critic),       # b1
        pl.BlockSpec((None, 1, H), per_critic),       # g1
        pl.BlockSpec((None, 1, H), per_critic),       # be1
        pl.BlockSpec((None, 1, H), per_critic),       # w2 row
        pl.BlockSpec((None, 1, 1), per_critic),       # b2
        pl.BlockSpec((None, B, H), per_critic),       # dropout mask 1
        pl.BlockSpec((None, B, H), per_critic),       # dropout mask 2
    ]

    q_per_critic = pl.pallas_call(
        _ego_critic_kernel,
        out_shape=jax.ShapeDtypeStruct((n, B, 1), jnp.float32),
        grid=(n,),
        in_specs=in_specs,
        out_specs=pl.BlockSpec((None, B, 1), per_critic),
        compiler_params=pltpu.CompilerParams(
            dimension_semantics=("parallel",),          # ensemble axis -> both v7x TCs
            vmem_limit_bytes=48 * 1024 * 1024,          # headroom for hidden=2048, bf16 weights
        ),
    )(
        ego,
        params["w0"], params["b0"], params["g0"], params["be0"],
        params["w1"], params["b1"], params["g1"], params["be1"],
        params["w2"], params["b2"],
        m1, m2,
    )

    return jnp.mean(q_per_critic, axis=0)   # (B, 1)


def reference_forward(s, a, params, dropout_masks):
    """Pure-JAX reference with identical dtype choices (bf16 matmul operands)."""
    ego = jnp.concatenate([s, a], axis=1).astype(jnp.float32)
    m1, m2 = dropout_masks[0], dropout_masks[1]
    n = params["w0"].shape[0]
    qs = []
    for c in range(n):
        h = jnp.dot(ego.astype(jnp.bfloat16), params["w0"][c],
                    preferred_element_type=jnp.float32) + params["b0"][c]
        h = _layer_norm(h, params["g0"][c], params["be0"][c])
        h = jnp.maximum(h, 0.0) * m1[c]
        h = jnp.dot(h.astype(jnp.bfloat16), params["w1"][c],
                    preferred_element_type=jnp.float32) + params["b1"][c]
        h = _layer_norm(h, params["g1"][c], params["be1"][c])
        h = jnp.maximum(h, 0.0) * m2[c]
        q = jnp.sum(h * params["w2"][c], axis=-1, keepdims=True) + params["b2"][c]
        qs.append(q)
    return jnp.mean(jnp.stack(qs, axis=0), axis=0)


def init_params(key, state_dim, hidden_size, n_critics):
    """Per-critic-stacked params mimicking nn.Linear's U(-1/sqrt(fan_in), ...)."""
    din = state_dim + 1
    keys = jax.random.split(key, n_critics)

    def linear(kk, fan_in, fan_out):
        bound = 1.0 / float(fan_in) ** 0.5
        kw, kb = jax.random.split(kk)
        w = jax.random.uniform(kw, (fan_in, fan_out), jnp.float32, -bound, bound)
        b = jax.random.uniform(kb, (1, fan_out), jnp.float32, -bound, bound)
        return w, b

    def one_critic(k):
        k0, k1, k2 = jax.random.split(k, 3)
        w0, b0 = linear(k0, din, hidden_size)
        w1, b1 = linear(k1, hidden_size, hidden_size)
        w2, b2 = linear(k2, hidden_size, 1)
        ones = jnp.ones((1, hidden_size), jnp.float32)
        zeros = jnp.zeros((1, hidden_size), jnp.float32)
        return dict(
            w0=w0.astype(jnp.bfloat16), b0=b0, g0=ones, be0=zeros,
            w1=w1.astype(jnp.bfloat16), b1=b1, g1=ones, be1=zeros,
            w2=w2.reshape(1, hidden_size),   # stored as a row for the lane reduction
            b2=b2.reshape(1, 1),
        )

    per = [one_critic(k) for k in keys]
    return {name: jnp.stack([p[name] for p in per], axis=0) for name in per[0]}


if __name__ == "__main__":
    key = jax.random.PRNGKey(0)
    kp, ks, ka, kd = jax.random.split(key, 4)

    batch = 8
    state_dim = 16          # ego input dim = state_dim + 1 (action concat)
    hidden_size = 128       # small stand-in for the module's default 2048
    n_critics = 2
    dropout_p = 0.03

    params = init_params(kp, state_dim, hidden_size, n_critics)
    s = jax.random.normal(ks, (batch, state_dim), jnp.float32)
    a = jax.random.normal(ka, (batch, 1), jnp.float32)
    masks = make_dropout_masks(kd, n_critics, batch, hidden_size, dropout_p)

    q_mean = crossq_vector_critic_forward(s, a, params, masks)
    q_mean = jax.block_until_ready(q_mean)

    assert q_mean.shape == (batch, 1)
    assert bool(jnp.all(jnp.isfinite(q_mean)))

    q_ref = reference_forward(s, a, params, masks)
    assert bool(jnp.allclose(q_mean, q_ref, rtol=1e-2, atol=1e-2))

    print("KERNEL_OK")
</pallas_src>

<mosaic_0001>
module attributes {stable_mosaic.version = 11 : i64} {
  func.func @_ego_critic_kernel(%arg0: i32, %arg1: memref<8x17xf32, #tpu.memory_space<vmem>>, %arg2: memref<1x17x128xbf16, #tpu.memory_space<vmem>>, %arg3: memref<1x1x128xf32, #tpu.memory_space<vmem>>, %arg4: memref<1x1x128xf32, #tpu.memory_space<vmem>>, %arg5: memref<1x1x128xf32, #tpu.memory_space<vmem>>, %arg6: memref<1x128x128xbf16, #tpu.memory_space<vmem>>, %arg7: memref<1x1x128xf32, #tpu.memory_space<vmem>>, %arg8: memref<1x1x128xf32, #tpu.memory_space<vmem>>, %arg9: memref<1x1x128xf32, #tpu.memory_space<vmem>>, %arg10: memref<1x1x128xf32, #tpu.memory_space<vmem>>, %arg11: memref<1x1x1xf32, #tpu.memory_space<vmem>>, %arg12: memref<1x8x128xf32, #tpu.memory_space<vmem>>, %arg13: memref<1x8x128xf32, #tpu.memory_space<vmem>>, %arg14: memref<1x8x1xf32, #tpu.memory_space<vmem>>) attributes {dimension_semantics = [#tpu.dimension_semantics<parallel>], iteration_bounds = array<i64: 2>, scalar_prefetch = 0 : i64, scratch_operands = 0 : i64, tpu.core_type = #tpu.core_type<tc>, window_params = [{pipeline_mode = #tpu.pipeline_mode<synchronous>, transform_indices = @transform_0, window_bounds = array<i64: 8, 17>}, {transform_indices = @transform_1, window_bounds = array<i64: 1, 17, 128>}, {transform_indices = @transform_2, window_bounds = array<i64: 1, 1, 128>}, {transform_indices = @transform_3, window_bounds = array<i64: 1, 1, 128>}, {transform_indices = @transform_4, window_bounds = array<i64: 1, 1, 128>}, {transform_indices = @transform_5, window_bounds = array<i64: 1, 128, 128>}, {transform_indices = @transform_6, window_bounds = array<i64: 1, 1, 128>}, {transform_indices = @transform_7, window_bounds = array<i64: 1, 1, 128>}, {transform_indices = @transform_8, window_bounds = array<i64: 1, 1, 128>}, {transform_indices = @transform_9, window_bounds = array<i64: 1, 1, 128>}, {transform_indices = @transform_10, window_bounds = array<i64: 1, 1, 1>}, {transform_indices = @transform_11, window_bounds = array<i64: 1, 8, 128>}, {transform_indices = @transform_12, window_bounds = array<i64: 1, 8, 128>}, {transform_indices = @transform_13, window_bounds = array<i64: 1, 8, 1>}]} {
    %c0 = arith.constant 0 : index
    %c0_0 = arith.constant 0 : index
    %0 = vector.load %arg1[%c0, %c0_0] : memref<8x17xf32, #tpu.memory_space<vmem>>, vector<8x17xf32>
    %1 = arith.truncf %0 : vector<8x17xf32> to vector<8x17xbf16>
    %c0_1 = arith.constant 0 : index
    %c0_2 = arith.constant 0 : index
    %c0_3 = arith.constant 0 : index
    %2 = vector.load %arg2[%c0_1, %c0_2, %c0_3] : memref<1x17x128xbf16, #tpu.memory_space<vmem>>, vector<1x17x128xbf16>
    %3 = vector.shape_cast %2 : vector<1x17x128xbf16> to vector<17x128xbf16>
    %cst = arith.constant dense<0.000000e+00> : vector<8x128xf32>
    %4 = tpu.matmul %1, %3, %cst {dimension_numbers = #tpu.dot_dimension_numbers<[1], [0], [0], [1], [0, 0, 1, 1], [], []>} : vector<8x17xbf16>, vector<17x128xbf16>, vector<8x128xf32> -> vector<8x128xf32>
    %c0_4 = arith.constant 0 : index
    %c0_5 = arith.constant 0 : index
    %c0_6 = arith.constant 0 : index
    %5 = vector.load %arg3[%c0_4, %c0_5, %c0_6] : memref<1x1x128xf32, #tpu.memory_space<vmem>>, vector<1x1x128xf32>
    %6 = vector.shape_cast %5 : vector<1x1x128xf32> to vector<1x128xf32>
    %7 = vector.broadcast %6 : vector<1x128xf32> to vector<8x128xf32>
    %8 = arith.addf %4, %7 : vector<8x128xf32>
    %c0_7 = arith.constant 0 : index
    %c0_8 = arith.constant 0 : index
    %c0_9 = arith.constant 0 : index
    %9 = vector.load %arg4[%c0_7, %c0_8, %c0_9] : memref<1x1x128xf32, #tpu.memory_space<vmem>>, vector<1x1x128xf32>
    %10 = vector.shape_cast %9 : vector<1x1x128xf32> to vector<1x128xf32>
    %c0_10 = arith.constant 0 : index
    %c0_11 = arith.constant 0 : index
    %c0_12 = arith.constant 0 : index
    %11 = vector.load %arg5[%c0_10, %c0_11, %c0_12] : memref<1x1x128xf32, #tpu.memory_space<vmem>>, vector<1x1x128xf32>
    %12 = vector.shape_cast %11 : vector<1x1x128xf32> to vector<1x128xf32>
    %cst_13 = arith.constant dense<0.000000e+00> : vector<8xf32>
    %13 = vector.multi_reduction <add>, %8, %cst_13 [1] : vector<8x128xf32> to vector<8xf32>
    %14 = vector.shape_cast %13 : vector<8xf32> to vector<8x1xf32>
    %cst_14 = arith.constant 1.280000e+02 : f32
    %15 = vector.broadcast %cst_14 : f32 to vector<8x1xf32>
    %16 = arith.divf %14, %15 : vector<8x1xf32>
    %17 = vector.broadcast %16 : vector<8x1xf32> to vector<8x128xf32>
    %18 = arith.subf %8, %17 : vector<8x128xf32>
    %19 = arith.mulf %18, %18 : vector<8x128xf32>
    %cst_15 = arith.constant dense<0.000000e+00> : vector<8xf32>
    %20 = vector.multi_reduction <add>, %19, %cst_15 [1] : vector<8x128xf32> to vector<8xf32>
    %21 = vector.shape_cast %20 : vector<8xf32> to vector<8x1xf32>
    %cst_16 = arith.constant 1.280000e+02 : f32
    %22 = vector.broadcast %cst_16 : f32 to vector<8x1xf32>
    %23 = arith.divf %21, %22 : vector<8x1xf32>
    %24 = vector.broadcast %16 : vector<8x1xf32> to vector<8x128xf32>
    %25 = arith.subf %8, %24 : vector<8x128xf32>
    %cst_17 = arith.constant 9.99999974E-6 : f32
    %26 = vector.broadcast %cst_17 : f32 to vector<8x1xf32>
    %27 = arith.addf %23, %26 : vector<8x1xf32>
    %28 = math.rsqrt %27 : vector<8x1xf32>
    %29 = vector.broadcast %28 : vector<8x1xf32> to vector<8x128xf32>
    %30 = arith.mulf %25, %29 : vector<8x128xf32>
    %31 = vector.broadcast %10 : vector<1x128xf32> to vector<8x128xf32>
    %32 = arith.mulf %30, %31 : vector<8x128xf32>
    %33 = vector.broadcast %12 : vector<1x128xf32> to vector<8x128xf32>
    %34 = arith.addf %32, %33 : vector<8x128xf32>
    %cst_18 = arith.constant 0.000000e+00 : f32
    %35 = vector.broadcast %cst_18 : f32 to vector<8x128xf32>
    %36 = arith.maximumf %34, %35 : vector<8x128xf32>
    %c0_19 = arith.constant 0 : index
    %c0_20 = arith.constant 0 : index
    %c0_21 = arith.constant 0 : index
    %37 = vector.load %arg12[%c0_19, %c0_20, %c0_21] : memref<1x8x128xf32, #tpu.memory_space<vmem>>, vector<1x8x128xf32>
    %38 = vector.shape_cast %37 : vector<1x8x128xf32> to vector<8x128xf32>
    %39 = arith.mulf %36, %38 : vector<8x128xf32>
    %40 = arith.truncf %39 : vector<8x128xf32> to vector<8x128xbf16>
    %c0_22 = arith.constant 0 : index
    %c0_23 = arith.constant 0 : index
    %c0_24 = arith.constant 0 : index
    %41 = vector.load %arg6[%c0_22, %c0_23, %c0_24] : memref<1x128x128xbf16, #tpu.memory_space<vmem>>, vector<1x128x128xbf16>
    %42 = vector.shape_cast %41 : vector<1x128x128xbf16> to vector<128x128xbf16>
    %cst_25 = arith.constant dense<0.000000e+00> : vector<8x128xf32>
    %43 = tpu.matmul %40, %42, %cst_25 {dimension_numbers = #tpu.dot_dimension_numbers<[1], [0], [0], [1], [0, 0, 1, 1], [], []>} : vector<8x128xbf16>, vector<128x128xbf16>, vector<8x128xf32> -> vector<8x128xf32>
    %c0_26 = arith.constant 0 : index
    %c0_27 = arith.constant 0 : index
    %c0_28 = arith.constant 0 : index
    %44 = vector.load %arg7[%c0_26, %c0_27, %c0_28] : memref<1x1x128xf32, #tpu.memory_space<vmem>>, vector<1x1x128xf32>
    %45 = vector.shape_cast %44 : vector<1x1x128xf32> to vector<1x128xf32>
    %46 = vector.broadcast %45 : vector<1x128xf32> to vector<8x128xf32>
    %47 = arith.addf %43, %46 : vector<8x128xf32>
    %c0_29 = arith.constant 0 : index
    %c0_30 = arith.constant 0 : index
    %c0_31 = arith.constant 0 : index
    %48 = vector.load %arg8[%c0_29, %c0_30, %c0_31] : memref<1x1x128xf32, #tpu.memory_space<vmem>>, vector<1x1x128xf32>
    %49 = vector.shape_cast %48 : vector<1x1x128xf32> to vector<1x128xf32>
    %c0_32 = arith.constant 0 : index
    %c0_33 = arith.constant 0 : index
    %c0_34 = arith.constant 0 : index
    %50 = vector.load %arg9[%c0_32, %c0_33, %c0_34] : memref<1x1x128xf32, #tpu.memory_space<vmem>>, vector<1x1x128xf32>
    %51 = vector.shape_cast %50 : vector<1x1x128xf32> to vector<1x128xf32>
    %cst_35 = arith.constant dense<0.000000e+00> : vector<8xf32>
    %52 = vector.multi_reduction <add>, %47, %cst_35 [1] : vector<8x128xf32> to vector<8xf32>
    %53 = vector.shape_cast %52 : vector<8xf32> to vector<8x1xf32>
    %cst_36 = arith.constant 1.280000e+02 : f32
    %54 = vector.broadcast %cst_36 : f32 to vector<8x1xf32>
    %55 = arith.divf %53, %54 : vector<8x1xf32>
    %56 = vector.broadcast %55 : vector<8x1xf32> to vector<8x128xf32>
    %57 = arith.subf %47, %56 : vector<8x128xf32>
    %58 = arith.mulf %57, %57 : vector<8x128xf32>
    %cst_37 = arith.constant dense<0.000000e+00> : vector<8xf32>
    %59 = vector.multi_reduction <add>, %58, %cst_37 [1] : vector<8x128xf32> to vector<8xf32>
    %60 = vector.shape_cast %59 : vector<8xf32> to vector<8x1xf32>
    %cst_38 = arith.constant 1.280000e+02 : f32
    %61 = vector.broadcast %cst_38 : f32 to vector<8x1xf32>
    %62 = arith.divf %60, %61 : vector<8x1xf32>
    %63 = vector.broadcast %55 : vector<8x1xf32> to vector<8x128xf32>
    %64 = arith.subf %47, %63 : vector<8x128xf32>
    %cst_39 = arith.constant 9.99999974E-6 : f32
    %65 = vector.broadcast %cst_39 : f32 to vector<8x1xf32>
    %66 = arith.addf %62, %65 : vector<8x1xf32>
    %67 = math.rsqrt %66 : vector<8x1xf32>
    %68 = vector.broadcast %67 : vector<8x1xf32> to vector<8x128xf32>
    %69 = arith.mulf %64, %68 : vector<8x128xf32>
    %70 = vector.broadcast %49 : vector<1x128xf32> to vector<8x128xf32>
    %71 = arith.mulf %69, %70 : vector<8x128xf32>
    %72 = vector.broadcast %51 : vector<1x128xf32> to vector<8x128xf32>
    %73 = arith.addf %71, %72 : vector<8x128xf32>
    %cst_40 = arith.constant 0.000000e+00 : f32
    %74 = vector.broadcast %cst_40 : f32 to vector<8x128xf32>
    %75 = arith.maximumf %73, %74 : vector<8x128xf32>
    %c0_41 = arith.constant 0 : index
    %c0_42 = arith.constant 0 : index
    %c0_43 = arith.constant 0 : index
    %76 = vector.load %arg13[%c0_41, %c0_42, %c0_43] : memref<1x8x128xf32, #tpu.memory_space<vmem>>, vector<1x8x128xf32>
    %77 = vector.shape_cast %76 : vector<1x8x128xf32> to vector<8x128xf32>
    %78 = arith.mulf %75, %77 : vector<8x128xf32>
    %c0_44 = arith.constant 0 : index
    %c0_45 = arith.constant 0 : index
    %c0_46 = arith.constant 0 : index
    %79 = vector.load %arg10[%c0_44, %c0_45, %c0_46] : memref<1x1x128xf32, #tpu.memory_space<vmem>>, vector<1x1x128xf32>
    %80 = vector.shape_cast %79 : vector<1x1x128xf32> to vector<1x128xf32>
    %81 = vector.broadcast %80 : vector<1x128xf32> to vector<8x128xf32>
    %82 = arith.mulf %78, %81 : vector<8x128xf32>
    %cst_47 = arith.constant dense<0.000000e+00> : vector<8xf32>
    %83 = vector.multi_reduction <add>, %82, %cst_47 [1] : vector<8x128xf32> to vector<8xf32>
    %84 = vector.shape_cast %83 : vector<8xf32> to vector<8x1xf32>
    %c0_48 = arith.constant 0 : index
    %c0_49 = arith.constant 0 : index
    %c0_50 = arith.constant 0 : index
    %85 = vector.load %arg11[%c0_48, %c0_49, %c0_50] : memref<1x1x1xf32, #tpu.memory_space<vmem>>, vector<1x1x1xf32>
    %86 = vector.shape_cast %85 : vector<1x1x1xf32> to vector<1x1xf32>
    %87 = vector.broadcast %86 : vector<1x1xf32> to vector<8x1xf32>
    %88 = arith.addf %84, %87 : vector<8x1xf32>
    %c0_51 = arith.constant 0 : index
    %c0_52 = arith.constant 0 : index
    %c0_53 = arith.constant 0 : index
    %89 = vector.load %arg14[%c0_51, %c0_52, %c0_53] : memref<1x8x1xf32, #tpu.memory_space<vmem>>, vector<1x8x1xf32>
    %90 = vector.shape_cast %89 : vector<1x8x1xf32> to vector<8x1xf32>
    %91 = vector.shape_cast %88 : vector<8x1xf32> to vector<1x8x1xf32>
    tpu.vector_store %arg14[%c0_51, %c0_52, %c0_53], %91 {strides = array<i32>} : memref<1x8x1xf32, #tpu.memory_space<vmem>>, vector<1x8x1xf32>,
    return
  }
  func.func @transform_0(%arg0: i32) -> (i32, i32) {
    %c0_i32 = arith.constant 0 : i32
    %c0_i32_0 = arith.constant 0 : i32
    %c0_i32_1 = arith.constant 0 : i32
    return %c0_i32, %c0_i32_0 : i32, i32
  }
  func.func @transform_1(%arg0: i32) -> (i32, i32, i32) {
    %c0_i32 = arith.constant 0 : i32
    %c0_i32_0 = arith.constant 0 : i32
    %c0_i32_1 = arith.constant 0 : i32
    return %arg0, %c0_i32, %c0_i32_0 : i32, i32, i32
  }
  func.func @transform_2(%arg0: i32) -> (i32, i32, i32) {
    %c0_i32 = arith.constant 0 : i32
    %c0_i32_0 = arith.constant 0 : i32
    %c0_i32_1 = arith.constant 0 : i32
    return %arg0, %c0_i32, %c0_i32_0 : i32, i32, i32
  }
  func.func @transform_3(%arg0: i32) -> (i32, i32, i32) {
    %c0_i32 = arith.constant 0 : i32
    %c0_i32_0 = arith.constant 0 : i32
    %c0_i32_1 = arith.constant 0 : i32
    return %arg0, %c0_i32, %c0_i32_0 : i32, i32, i32
  }
  func.func @transform_4(%arg0: i32) -> (i32, i32, i32) {
    %c0_i32 = arith.constant 0 : i32
    %c0_i32_0 = arith.constant 0 : i32
    %c0_i32_1 = arith.constant 0 : i32
    return %arg0, %c0_i32, %c0_i32_0 : i32, i32, i32
  }
  func.func @transform_5(%arg0: i32) -> (i32, i32, i32) {
    %c0_i32 = arith.constant 0 : i32
    %c0_i32_0 = arith.constant 0 : i32
    %c0_i32_1 = arith.constant 0 : i32
    return %arg0, %c0_i32, %c0_i32_0 : i32, i32, i32
  }
  func.func @transform_6(%arg0: i32) -> (i32, i32, i32) {
    %c0_i32 = arith.constant 0 : i32
    %c0_i32_0 = arith.constant 0 : i32
    %c0_i32_1 = arith.constant 0 : i32
    return %arg0, %c0_i32, %c0_i32_0 : i32, i32, i32
  }
  func.func @transform_7(%arg0: i32) -> (i32, i32, i32) {
    %c0_i32 = arith.constant 0 : i32
    %c0_i32_0 = arith.constant 0 : i32
    %c0_i32_1 = arith.constant 0 : i32
    return %arg0, %c0_i32, %c0_i32_0 : i32, i32, i32
  }
  func.func @transform_8(%arg0: i32) -> (i32, i32, i32) {
    %c0_i32 = arith.constant 0 : i32
    %c0_i32_0 = arith.constant 0 : i32
    %c0_i32_1 = arith.constant 0 : i32
    return %arg0, %c0_i32, %c0_i32_0 : i32, i32, i32
  }
  func.func @transform_9(%arg0: i32) -> (i32, i32, i32) {
    %c0_i32 = arith.constant 0 : i32
    %c0_i32_0 = arith.constant 0 : i32
    %c0_i32_1 = arith.constant 0 : i32
    return %arg0, %c0_i32, %c0_i32_0 : i32, i32, i32
  }
  func.func @transform_10(%arg0: i32) -> (i32, i32, i32) {
    %c0_i32 = arith.constant 0 : i32
    %c0_i32_0 = arith.constant 0 : i32
    %c0_i32_1 = arith.constant 0 : i32
    return %arg0, %c0_i32, %c0_i32_0 : i32, i32, i32
  }
  func.func @transform_11(%arg0: i32) -> (i32, i32, i32) {
    %c0_i32 = arith.constant 0 : i32
    %c0_i32_0 = arith.constant 0 : i32
    %c0_i32_1 = arith.constant 0 : i32
    return %arg0, %c0_i32, %c0_i32_0 : i32, i32, i32
  }
  func.func @transform_12(%arg0: i32) -> (i32, i32, i32) {
    %c0_i32 = arith.constant 0 : i32
    %c0_i32_0 = arith.constant 0 : i32
    %c0_i32_1 = arith.constant 0 : i32
    return %arg0, %c0_i32, %c0_i32_0 : i32, i32, i32
  }
  func.func @transform_13(%arg0: i32) -> (i32, i32, i32) {
    %c0_i32 = arith.constant 0 : i32
    %c0_i32_0 = arith.constant 0 : i32
    %c0_i32_1 = arith.constant 0 : i32
    return %arg0, %c0_i32, %c0_i32_0 : i32, i32, i32
  }
}

</mosaic_0001>

<bundles_post_ra>
// kernel: tpu_custom_call.1
= control target key start
LH: loop header
LB: loop body
LE: loop exit
PB: predicated region body
PF: predicated region fallthrough
CT: control target
= control target key end

     0   :  { %18 = vsyncpa [#allocation3], 0  ;;  %s1500_s0 = inlined_call_operand.vmem [shape: f32[8,17], index: 0, kind: input, shape index: {}]   ;;  %s1501_s1 = inlined_call_operand.vmem [shape: bf16[2,17,128], index: 1, kind: input, shape index: {}]   ;;  %s1502_s2 = inlined_call_operand.vmem [shape: f32[2,1,128], index: 2, kind: input, shape index: {}]   ;;  %s1503_s3 = inlined_call_operand.vmem [shape: f32[2,1,128], index: 3, kind: input, shape index: {}]   ;;  %s1504_s4 = inlined_call_operand.vmem [shape: f32[2,1,128], index: 4, kind: input, shape index: {}]   ;;  %s1505_s5 = inlined_call_operand.hbm [shape: bf16[2,128,128], index: 5, kind: input, shape index: {}]   ;;  %s1506_s6 = inlined_call_operand.vmem [shape: f32[2,1,128], index: 6, kind: input, shape index: {}]   ;;  %s1507_s7 = inlined_call_operand.vmem [shape: f32[2,1,128], index: 7, kind: input, shape index: {}]   ;;  %s1508_s8 = inlined_call_operand.vmem [shape: f32[2,1,128], index: 8, kind: input, shape index: {}]   ;;  %s1509_s9 = inlined_call_operand.vmem [shape: f32[2,1,128], index: 9, kind: input, shape index: {}]   ;;  %s1510_s10 = inlined_call_operand.vmem [shape: f32[2,1,1], index: 10, kind: input, shape index: {}]   ;;  %s1511_s11 = inlined_call_operand.vmem [shape: f32[2,8,128], index: 11, kind: input, shape index: {}]   ;;  %s1512_s12 = inlined_call_operand.vmem [shape: f32[2,8,128], index: 12, kind: input, shape index: {}]   ;;  %s1513_s13 = inlined_call_operand.vmem [shape: f32[2,8,1], index: 13, kind: output, shape index: {}]  }
   0x1   :  { %20 = vsyncpa [#allocation3 + $0x1], 0  ;;  %s1336_s25 = smov 0   ;;  %s1338_s26 = smov 0  }
   0x2   :  { %s1340_s27 = smov 0   ;;  %s1342_s28 = smov 0  }
   0x3 LB: > { %1518 = sst [smem:[#allocation5_spill]] %s1254_s27  ;;  %s1355_s29 = sadd.s32 4294967295, %s1258_s28   ;;  %s1258_s28 = sphi %s1342_s28, %s1525_s28   ;;  %s1254_s27 = sphi %s1340_s27, %s1530_s27   ;;  %s1250_s26 = sphi %s1338_s26, %s1529_s26   ;;  %s1246_s25 = sphi %s1336_s25, %s1528_s25  }
   0x4   : > { %s1358_s30 = sadd.s32 1, %s1258_s28   ;;  %s158_s15 = sadd.s32 1, %s1254_s27 }
   0x5   : > { %1519 = sst [smem:[#allocation6_spill]] %s1358_s30  ;;  %s155_s14 = ssub.s32 %s1258_s28, %s1358_s30 }
   0x6   : > { %p156_p0 = scmp.eq.s32.totalorder %s155_s14, 0  ;;  %p165_p1 = scmp.ne.s32.totalorder %s1254_s27, %s1250_s26 }
   0x7   : > { %p166_p2 = scmp.eq.s32.totalorder %s1258_s28, 0  ;;  %p171_p3 = scmp.ne.s32.totalorder %s1250_s26, %s1246_s25 }
   0x8   : > { %s1368_s16 = scalar_select %p156_p0, %s1254_s27, %s158_s15  }
   0x9   : > { %p167_p4 = por %p166_p2, %p165_p1  ;;  %p172_p5 = scmp.eq.s32.totalorder %s1355_s29, 0 }
   0xa   : > { %1520 = sst [smem:[#allocation7_spill]] %s1368_s16  ;;  %p1144_p6 = scmp.lt.s32.totalorder %s1258_s28, 2 }
   0xb   : > { %p1372_p7 = por %p172_p5, %p171_p3  ;;  %s432_s18 = sand.u32 1, %s1254_s27  }
   0xc   : > { %s1066_s19 = sshll.u32 %s432_s18, 6  ;;  %s1096_s20 = sshll.u32 %s1258_s28, 10 }
   0xd   : > { %s1521_s17 = scalar_select %p1372_p7, 1, 0 }
   0xe   : > { %s1381_s23 = scalar_lea.hbm %s1505_s5, %s1096_s20  ;;  %s436_s24 = scalar_lea.vmem [#allocation2], %s1066_s19 }
   0xf   : > { %s443_s25 = sshll.u32 %s436_s24, 4  ;;  %p1385_p8 = pnand %p1144_p6, %p167_p4  ;;  %s1383_s25 = int_to_ptr.vmem [resolvable:$true] %s443_s25 }
  0x10   : > { %s1390_s15 = scalar_lea.sflag [#allocation3], %s432_s18  ;;  %s1196_s16 = scalar_lea.hbm %s1381_s23, 1024 }
  0x11   : > { %p1197_p10 = scmp.ne.s32.totalorder %s1381_s23, %s1196_s16  ;;  %p1198_p11 = pneg %p1385_p8 }
  0x12   : > { %s1201_s19 = scalar_lea.hbm %s1505_s5, 2048  ;;  %p1202_p0 = scmp.lt.s32.totalorder %s1381_s23, %s1505_s5 }
  0x13   : > { %p1199_p12 = pnand %p1198_p11, %p1197_p10  ;;  %p1203_p1 = scmp.lt.s32.totalorder %s1201_s19, %s1196_s16 }
  0x15   : > { %p1200_p13 = pneg %p1199_p12  ;;  %p1204_p2 = por %p1203_p1, %p1202_p0 }
  0x17   : > { %p1205_p3 = pnand %p1204_p2, %p1200_p13 }
  0x19   : > { %1208 = shalt.err (!%p1205_p3)
}
  0x1a   : > { %s1209_s18 = scalar_lea.vmem %s1383_s25, 1024  ;;  %s1260_s27 = smov [#allocation2]  }
  0x1b   : > { %p1210_p4 = scmp.ne.s32.totalorder %s1383_s25, %s1209_s18  ;;  %s1214_s30 = sshll.u32 %s1260_s27, 4  ;;  %s1215_s30 = int_to_ptr.vmem [resolvable:$false] %s1214_s30 }
  0x1c   : > { %s1216_s20 = scalar_lea.vmem %s1215_s30, 2048  ;;  %p1217_p10 = scmp.lt.s32.totalorder %s1383_s25, %s1215_s30 }
  0x1d   : > { %p1212_p5 = pnand %p1210_p4, %p1198_p11  ;;  %p1218_p12 = scmp.lt.s32.totalorder %s1216_s20, %s1209_s18 }
  0x1f   : > { %p1213_p6 = pneg %p1212_p5  ;;  %p1219_p9 = por %p1218_p12, %p1217_p10 }
  0x21   : > { %p1220_p7 = pnand %p1219_p9, %p1213_p6 }
  0x23   : > { %1223 = shalt.err (!%p1220_p7)
}
  0x24   : > { %s1261_s16 = smov 64   ;;  %s1262_s21 = smov 4  }
  0x25   : > { %1143 = dma.hbm_to_vmem [thread:$0]  (!%p1385_p8), %s1381_s23, 1024, %s1383_s25, %s1390_s15, %s1261_s16, %s1261_s16, %s1262_s21  }
  0x26   : > { %p495_p11 = scmp.lt.s32.totalorder %s1258_s28, 3  ;;  %p1523_p13 = scmp.ge.s32.totalorder %s1258_s28, 1 }
  0x28   : > { %p496_p0 = pnand %p1523_p13, %p495_p11 }
  0x29   : > { %s501_s27 = sand.u32 (!%p496_p0), 1, %s1250_s26   ;;  %p1524_p7 = scmp.ne.s32.totalorder (!%p496_p0), %s1521_s17, 0 }
  0x2a   : > { %499 = sbr.rel (%p496_p0) target bundleno = 1219 (0x4c3), region = 72  ;;  %s1070_s30 = sshll.u32 (!%p496_p0), %s501_s27, 6 }
  0x2b   : > { %s502_s19 = scalar_lea.sflag (!%p496_p0), [#allocation3], %s501_s27  ;;  %s1415_s22 = scalar_lea.vmem (!%p496_p0), [#allocation2], %s1070_s30 }
  0x2f   : > { %1241 = dma.done.wait (%p1524_p7), %s502_s19, 1024  }
  0x30   : > { %1243 = vsyncadd (%p1524_p7), %s502_s19, 4294966272  ;;  %p584_p9 = scmp.lt.s32.totalorder %s1355_s29, 1  ;;  %v1263_v0 = vmov 0.0   ;;  %vm1264_vm0 = vmmov 0   ;;  %vm651_vm1 = vcmask 1040384   ;;  %v1265_v1 = vmov 0  }
  0x31   : > { %1109 = vmatprep.subr.bf16.mxu0 %v1263_v0  ;;  %1113 = vmatprep.mubr.msk.bf16.mxu0 %vm1264_vm0, %v1263_v0  ;;  %v653_v2 = vsel %vm651_vm1, 65535, %v1265_v1  ;;  %v626_v6 = vld [vmem:[%s1500_s0] sm:$0xff]  ;;  %vm647_vm2 = vcmask 138240   ;;  %v1184_v14 = vld [vmem:[%s1415_s22 + $0x38] sm:$0xff]   ;;  %v1185_v19 = vld [vmem:[%s1415_s22 + $0x30] sm:$0xff]   ;;  %vm888_vm3 = vcmask 7168  }
  0x32   : > { %s1532_s29 = smov (!%p584_p9, %s1355_s29), 1  ;;  %1117 = vmatprep.subr.bf16.mxu1 %v1263_v0  ;;  %1133 = vmatprep.mubr.msk.bf16.mxu1 %vm1264_vm0, %v1263_v0  ;;  %v627_v7 = vpack.c.bf16 %v626_v6, %v626_v6  ;;  %v1186_v20 = vld [vmem:[%s1415_s22 + $0x28] sm:$0xff]   ;;  %v1187_v21 = vld [vmem:[%s1415_s22 + $0x20] sm:$0xff]   ;;  %v1188_v22 = vld [vmem:[%s1415_s22 + $0x18] sm:$0xff]  }
  0x33   : > { %s1137_s28 = smul.u32 12, %s1532_s29  ;;  %s591_s20 = scalar_lea.vmem %s1502_s2, %s1532_s29  ;;  %1118 = vmatpush3.bf16.msra.mxu1 %v1184_v14  ;;  %v1189_v23 = vld [vmem:[%s1415_s22 + $0x10] sm:$0xff]   ;;  %v1190_v24 = vld [vmem:[%s1415_s22 + $0x8] sm:$0xff]   ;;  %v1191_v25 = vld [vmem:[%s1415_s22] sm:$0xff]  }
  0x34   : > { %v1075_v8 = vld [vmem:[%s591_s20] ss:$0 sm:$0xff]  ;;  %1119 = vmatprep.subr.bf16.mxu1 %v1263_v0  ;;  %s594_s27 = scalar_lea.vmem %s1503_s3, %s1532_s29  ;;  %s1453_s23 = sshll.u32 %s1532_s29, 3 }
  0x35   : > { %s588_s17 = scalar_lea.vmem %s1501_s1, %s1137_s28  ;;  %s597_s28 = scalar_lea.vmem %s1504_s4, %s1532_s29  ;;  %v1079_v30 = vld [vmem:[%s594_s27] ss:$0 sm:$0xff] }
  0x36   : > { %v1182_v3 = vld [vmem:[%s588_s17 + $0x8] ss:$0 sps:$4 sm:$0x11]   ;;  %v1183_v5 = vld [vmem:[%s588_s17] sm:$0xff]   ;;  %s616_s17 = scalar_lea.vmem %s1511_s11, %s1453_s23  ;;  %s600_s24 = scalar_lea.vmem %s1506_s6, %s1532_s29 }
  0x37   : > { %v655_v4 = vand.u32 %v1182_v3, %v653_v2  ;;  %1120 = vmatpush3.bf16.msra.mxu1 %v1185_v19  ;;  %v1080_v32 = vld [vmem:[%s597_s28] ss:$0 sm:$0xff]  ;;  %s603_s16 = scalar_lea.vmem %s1507_s7, %s1532_s29  ;;  %s606_s30 = scalar_lea.vmem %s1508_s8, %s1532_s29 }
  0x38   : > { %1121 = vmatprep.subr.bf16.mxu1 %v1263_v0  ;;  %v726_v35 = vld [vmem:[%s616_s17] sm:$0xff]  ;;  %s620_s22 = scalar_lea.vmem %s1512_s12, %s1453_s23  ;;  %s609_s14 = scalar_lea.vmem %s1509_s9, %s1532_s29 }
  0x39   : > { %1110 = vmatpush3.bf16.msra.mxu0 %v655_v4  ;;  %v1081_v39 = vld [vmem:[%s600_s24] ss:$0 sm:$0xff]  ;;  %s612_s18 = scalar_lea.vmem %s1510_s10, %s1532_s29  ;;  %s624_s21 = scalar_lea.vmem %s1513_s13, %s1453_s23 }
  0x3a   : > { %1111 = vmatprep.subr.bf16.mxu0 %v1263_v0  ;;  %v1090_v53 = vld [vmem:[%s603_s16] ss:$0 sm:$0xff] }
  0x3b   : > { %1122 = vmatpush3.bf16.msra.mxu1 %v1186_v20  ;;  %v1091_v55 = vld [vmem:[%s606_s30] ss:$0 sm:$0xff] }
  0x3c   : > { %1123 = vmatprep.subr.bf16.mxu1 %v1263_v0  ;;  %v868_v58 = vld [vmem:[%s620_s22] sm:$0xff] }
  0x3d   : > { %1112 = vmatpush3.bf16.msra.mxu0 %v1183_v5  ;;  %v1092_v60 = vld [vmem:[%s609_s14] ss:$0 sm:$0xff] }
  0x3e   : > { %v1093_v63 = vld [vmem:[%s612_s18] ss:$0 sm:$0xff] }
  0x3f   : > { %1124 = vmatpush3.bf16.msra.mxu1 %v1187_v21 }
  0x40   : > { %1114 = vmatmul.mubr.msk.bf16.vlgmr.msra.gmra.mxu0 %vm647_vm2, %v627_v7  ;;  %1125 = vmatprep.subr.bf16.mxu1 %v1263_v0 }
  0x43   : > { %1126 = vmatpush3.bf16.msra.mxu1 %v1188_v22 }
  0x44   : > { %1127 = vmatprep.subr.bf16.mxu1 %v1263_v0 }
  0x47   : > { %1128 = vmatpush3.bf16.msra.mxu1 %v1189_v23 }
  0x48   : > { %1129 = vmatprep.subr.bf16.mxu1 %v1263_v0 }
  0x4b   : > { %1130 = vmatpush3.bf16.msra.mxu1 %v1190_v24 }
  0x4c   : > { %1131 = vmatprep.subr.bf16.mxu1 %v1263_v0 }
  0x4f   : > { %1132 = vmatpush3.bf16.msra.mxu1 %v1191_v25 }
 0x100   : > { %v691_v9 = vpop.f32.mrf.mxu0 }
 0x101   : > { %v692_v10 = vadd.f32 %v1075_v8, %v691_v9 }
 0x102   : > { %v1115_v11 = vpop.f32.mrf.mxu0 }
 0x103   : > { %699 = vadd.xlane.f32.xlu0 %v692_v10 }
 0x104   : > { %v694_v12 = vpop.f32.mrf.mxu0 }
 0x106   : > { %v1116_v13 = vpop.f32.mrf.mxu0 }
 0x18c   : > { %v700_v15 = vpop.xlane.xlu0 %699 }
 0x18d   : > { %v702_v16 = vmul.f32 0.0078125, %v700_v15 }
 0x18f   : > { %v703_v17 = vsub.f32 %v692_v10, %v702_v16 }
 0x191   : > { %v704_v18 = vmul.f32 %v703_v17, %v703_v17 }
 0x193   : > { %705 = vadd.xlane.f32.xlu0 %v704_v18 }
 0x21c   : > { %v706_v26 = vpop.xlane.xlu0 %705 }
 0x21d   : > { %v707_v27 = vmul.f32 0.0078125, %v706_v26 }
 0x21f   : > { %v708_v28 = vadd.f32 1e-05, %v707_v27 }
 0x221   : > { %1192 = vrsqrt.f32 %v708_v28 }
 0x22e   : > { %v1193_v29 = vpop.eup %1192 }
 0x22f   : > { %v710_v31 = vmul.f32 %v1193_v29, %v703_v17 }
 0x231   : > { %v717_v33 = vmul.f32 %v1079_v30, %v710_v31 }
 0x233   : > { %v724_v34 = vadd.f32 %v1080_v32, %v717_v33 }
 0x235   : > { %v725_v36 = vmax.f32 %v724_v34, 0.0 }
 0x237   : > { %v727_v37 = vmul.f32 %v726_v35, %v725_v36 }
 0x239   : > { %v728_v38 = vpack.c.bf16 %v727_v37, %v727_v37 }
 0x23b   : > { %1134 = vmatmul.mubr.bf16.vlgmr.msra.gmra.mxu1 %v728_v38 }
 0x2fb   : > { %v834_v40 = vpop.f32.mrf.mxu1 }
 0x2fc   : > { %v835_v41 = vadd.f32 %v1081_v39, %v834_v40 }
 0x2fd   : > { %v1135_v42 = vpop.f32.mrf.mxu1 }
 0x2fe   : > { %842 = vadd.xlane.f32.xlu1 %v835_v41 }
 0x2ff   : > { %v837_v43 = vpop.f32.mrf.mxu1 }
 0x301   : > { %v1136_v44 = vpop.f32.mrf.mxu1 }
 0x387   : > { %v843_v45 = vpop.xlane.xlu1 %842 }
 0x388   : > { %v844_v46 = vmul.f32 0.0078125, %v843_v45 }
 0x38a   : > { %v845_v47 = vsub.f32 %v835_v41, %v844_v46 }
 0x38c   : > { %v846_v48 = vmul.f32 %v845_v47, %v845_v47 }
 0x38e   : > { %847 = vadd.xlane.f32.xlu1 %v846_v48 }
 0x417   : > { %v848_v49 = vpop.xlane.xlu1 %847 }
 0x418   : > { %v849_v50 = vmul.f32 0.0078125, %v848_v49 }
 0x41a   : > { %v850_v51 = vadd.f32 1e-05, %v849_v50 }
 0x41c   : > { %1194 = vrsqrt.f32 %v850_v51 }
 0x429   : > { %v1195_v52 = vpop.eup %1194 }
 0x42a   : > { %v852_v54 = vmul.f32 %v1195_v52, %v845_v47 }
 0x42c   : > { %v859_v56 = vmul.f32 %v1090_v53, %v852_v54 }
 0x42e   : > { %v866_v57 = vadd.f32 %v1091_v55, %v859_v56 }
 0x430   : > { %v867_v59 = vmax.f32 %v866_v57, 0.0 }
 0x432   : > { %v869_v61 = vmul.f32 %v868_v58, %v867_v59 }
 0x434   : > { %v877_v62 = vmul.f32 %v1092_v60, %v869_v61 }
 0x436   : > { %878 = vadd.xlane.f32.xlu0 %v877_v62 }
 0x4bf   : > { %v879_v0 = vpop.xlane.xlu0 %878 }
 0x4c0   : > { %v887_v1 = vadd.f32 %v1093_v63, %v879_v0 }
 0x4c2   : > { %889 = vst.msk [vmem:[%s624_s21] sm:$0xff] %vm888_vm3, %v887_v1 }
 0x4c3 PF: > { %s1525_s28 = sld [smem:[#allocation6_spill]]  ;;  %s1528_s25 = smov %s1250_s26 }
 0x4c4   : > { %s1526_s27 = sld [smem:[#allocation5_spill]] }
 0x4c5   : > { %s1527_s30 = sld [smem:[#allocation7_spill]] }
 0x4c9   : > { %p23_p8 = scmp.ge.s32.totalorder %s1525_s28, 4  }
 0x4ca   : > { %s1529_s26 = smov %s1526_s27 }
 0x4cb   : > { %s1530_s27 = smov %s1527_s30  ;;  %25 = sbr.rel (!%p23_p8) target bundleno = 3 (0x3), region = 145 }
 0x4d0   :  { %909 = vsyncpa [#allocation3], 1 }
 0x4d1   :  { %911 = vsyncpa [#allocation3 + $0x1], 1 }

</bundles_post_ra>
